<compile_context>
chip_gen: v7x
topology: tpu7x:2x2x1
jax: 0.10.0
libtpu: 0.0.40
codegen_flags: <defaults>
</compile_context>

<pallas_src>
import jax
import jax.numpy as jnp
from jax.experimental import pallas as pl
from jax.experimental.pallas import tpu as pltpu


def _mixed_op_kernel(w_ref, x_ref, w1_ref, b1_ref, w2_ref, b2_ref,
                     ck_ref, pm_ref, nm_ref, o_ref, acc_ref):
    # w_ref  : SMEM f32[4]          architecture mixing weights (softmax-ed)
    # x_ref  : VMEM (R, H)  f32     R = batch-sub-block * seq_len rows
    # w1_ref : VMEM (H, tk) bf16    FFN W1 k-tile (streamed over Hff)
    # w2_ref : VMEM (tk, H) bf16    FFN W2 k-tile
    # pm/nm  : VMEM (R, 1)  f32     per-sequence conv boundary masks
    # acc_ref: VMEM (R, H)  f32     scratch accumulator for the FFN output
    k = pl.program_id(1)
    n_k = pl.num_programs(1)

    x = x_ref[...]                                   # (R, H) float32
    R = x.shape[0]

    @pl.when(k == 0)
    def _init():
        acc_ref[...] = jnp.zeros_like(acc_ref)

    # --- op 2: FFN partial  relu(x @ W1[:, kt] + b1[kt]) @ W2[kt, :] ---------
    # Gated: pruned / one-hot architectures (weights[2] == 0) skip all MXU work.
    @pl.when(w_ref[2] != 0.0)
    def _ffn():
        h = jnp.dot(x.astype(jnp.bfloat16), w1_ref[...],
                    preferred_element_type=jnp.float32) + b1_ref[...]
        h = jnp.maximum(h, 0.0)
        acc_ref[...] += jnp.dot(h.astype(jnp.bfloat16), w2_ref[...],
                                preferred_element_type=jnp.float32)

    # --- finalize on the last K tile: conv + identity + mix ------------------
    @pl.when(k == n_k - 1)
    def _finalize():
        w_id, w_ffn, w_conv = w_ref[1], w_ref[2], w_ref[3]
        # Fold the architecture weight into the conv taps; identity folds into
        # the center tap (op 0 "Zero" contributes nothing).
        taps = w_conv * ck_ref[...]                              # (3, H)
        # Rolls are circular within the (R, H) block; rows rolled in from the
        # neighboring sequence are zeroed via the precomputed (R, 1) masks.
        x_prev = pltpu.roll(x, shift=1, axis=0) * pm_ref[...]
        x_next = pltpu.roll(x, shift=R - 1, axis=0) * nm_ref[...]
        mixed = (w_ffn * (acc_ref[...] + b2_ref[...])
                 + x * (taps[1:2, :] + w_id)
                 + x_prev * taps[0:1, :]
                 + x_next * taps[2:3, :])
        o_ref[...] = mixed.astype(o_ref.dtype)


def _pick_batch_block(batch, seq_len, target_rows, min_blocks=2):
    """Largest bb dividing `batch` whose rows fit the budget & (8,128) rule,
    preferring at least `min_blocks` row blocks (v7x has 2 TensorCores)."""
    # TODO(synk): time-tile with a 1-row halo when seq_len > target_rows.
    assert seq_len <= target_rows, "T > target_rows needs halo time-tiling"
    cands = [bb for bb in range(1, batch + 1)
             if batch % bb == 0 and bb * seq_len <= target_rows
             and ((bb * seq_len) % 8 == 0 or bb == batch)]
    if not cands:
        cands = [batch]                    # full-array block is always legal
    multi = [bb for bb in cands if batch // bb >= min_blocks]
    return max(multi) if multi else max(cands)


def _pick_k_tile(hff, target=512):
    """Largest multiple of 128 <= target dividing Hff (or Hff if small)."""
    if hff <= target:
        return hff
    best = hff
    for t in range(128, target + 1, 128):
        if hff % t == 0:
            best = t
    return best


def mixed_op_forward(x, weights, params, *, target_rows=512):
    """Weighted mix of candidate ops. x: [B, T, H] f32, weights: [4] f32."""
    B, T, H = x.shape
    w1, b1, w2, b2, ck = params
    Hff = w1.shape[1]

    bb = _pick_batch_block(B, T, target_rows)
    rows = bb * T
    n_blocks = (B * T) // rows
    tk = _pick_k_tile(Hff)
    n_k = Hff // tk

    x_flat = x.reshape(B * T, H)
    w1_bf = w1.astype(jnp.bfloat16)
    w2_bf = w2.astype(jnp.bfloat16)

    # Per-sequence time-boundary masks, hoisted out of the kernel.  Every row
    # block holds whole sequences starting at t=0, so one (rows, 1) mask pair
    # is valid for all blocks.
    t_in_seq = (jnp.arange(rows, dtype=jnp.int32) % T)[:, None]
    prev_mask = (t_in_seq != 0).astype(x.dtype)          # zero at t == 0
    next_mask = (t_in_seq != T - 1).astype(x.dtype)      # zero at t == T-1

    def resident(shape):
        # Block index never changes across the grid -> VMEM-resident with a
        # single buffer (default double-buffering would just waste VMEM).
        return pl.BlockSpec(shape, lambda b, k: (0,) * len(shape),
                            pipeline_mode=pl.Buffered(1))

    # Explicit VMEM budget (bytes) for this tiling, with headroom, clamped to
    # v7x's 64 MiB physical VMEM.
    f32b, bf16b = 4, 2
    vmem_bytes = (
        2 * rows * H * f32b                      # x row block (double-buffered)
        + 2 * rows * H * f32b                    # output row block
        + rows * H * f32b                        # acc scratch
        + 2 * (H * tk + tk * H) * bf16b          # W1/W2 K tiles (double-buffered)
        + 2 * tk * f32b                          # b1 K tile
        + (H + 3 * H + 2 * rows) * f32b)         # b2, conv taps, boundary masks
    vmem_limit = min(max(int(vmem_bytes * 1.3), 32 << 20), 64 << 20)

    cost = pl.CostEstimate(
        flops=4 * B * T * H * Hff + 8 * B * T * H,
        transcendentals=0,
        bytes_accessed=(2 * x_flat.size * f32b
                        + n_blocks * (w1_bf.size + w2_bf.size) * bf16b
                        + n_blocks * b1.size * f32b
                        + (b2.size + ck.size + 2 * rows) * f32b))

    out = pl.pallas_call(
        _mixed_op_kernel,
        out_shape=jax.ShapeDtypeStruct((B * T, H), x.dtype),
        grid=(n_blocks, n_k),
        in_specs=[
            pl.BlockSpec(memory_space=pltpu.MemorySpace.SMEM),   # mixing weights
            pl.BlockSpec((rows, H), lambda b, k: (b, 0)),        # x row block
            pl.BlockSpec((H, tk), lambda b, k: (0, k)),          # W1 K tile (bf16)
            pl.BlockSpec((1, tk), lambda b, k: (0, k)),          # b1 K tile
            pl.BlockSpec((tk, H), lambda b, k: (k, 0)),          # W2 K tile (bf16)
            resident((1, H)),                                    # b2
            resident((3, H)),                                    # conv taps
            resident((rows, 1)),                                 # prev boundary mask
            resident((rows, 1)),                                 # next boundary mask
        ],
        out_specs=pl.BlockSpec((rows, H), lambda b, k: (b, 0)),
        scratch_shapes=[pltpu.VMEM((rows, H), jnp.float32)],
        compiler_params=pltpu.CompilerParams(
            dimension_semantics=("parallel", "arbitrary"),
            vmem_limit_bytes=vmem_limit),
        cost_estimate=cost,
    )(weights, x_flat, w1_bf, b1, w2_bf, b2, ck, prev_mask, next_mask)

    return out.reshape(B, T, H)


def mixed_op_reference(x, weights, params):
    """Plain-JAX (f32) reference for the same mixed op."""
    w1, b1, w2, b2, ck = params
    ident = x
    ffn = jnp.maximum(x @ w1 + b1, 0.0) @ w2 + b2
    x_prev = jnp.pad(x, ((0, 0), (1, 0), (0, 0)))[:, :-1]
    x_next = jnp.pad(x, ((0, 0), (0, 1), (0, 0)))[:, 1:]
    conv = x_prev * ck[0] + x * ck[1] + x_next * ck[2]
    return weights[1] * ident + weights[2] * ffn + weights[3] * conv


if __name__ == "__main__":
    B, T, H, Hff = 2, 8, 128, 256

    key = jax.random.PRNGKey(0)
    kx, kl, k1, k2, k3, k4, k5 = jax.random.split(key, 7)

    x = jax.random.normal(kx, (B, T, H), dtype=jnp.float32)

    # Architecture mixing weights (softmax over 4 candidate ops).
    logits = jax.random.normal(kl, (4,), dtype=jnp.float32)
    weights = jax.nn.softmax(logits)

    # Deterministic parameter init (synthetic; no checkpoint loading).
    w1 = jax.random.normal(k1, (H, Hff), dtype=jnp.float32) * (1.0 / jnp.sqrt(H))
    b1 = jax.random.normal(k2, (1, Hff), dtype=jnp.float32) * 0.01
    w2 = jax.random.normal(k3, (Hff, H), dtype=jnp.float32) * (1.0 / jnp.sqrt(Hff))
    b2 = jax.random.normal(k4, (1, H), dtype=jnp.float32) * 0.01
    ck = jax.random.normal(k5, (3, H), dtype=jnp.float32) * 0.1
    params = (w1, b1, w2, b2, ck)

    out = mixed_op_forward(x, weights, params)
    out = jax.block_until_ready(out)

    ref = mixed_op_reference(x, weights, params)
    assert out.shape == (B, T, H)
    # bf16 matmul operands (f32 accumulation) -> loosened tolerance vs the
    # full-f32 reference.
    assert jnp.allclose(out, ref, atol=3e-2, rtol=3e-2), float(
        jnp.max(jnp.abs(out - ref)))

    print("KERNEL_OK")
</pallas_src>

<mosaic_0001>
module attributes {stable_mosaic.version = 11 : i64} {
  func.func @_mixed_op_kernel(%arg0: i32, %arg1: i32, %arg2: memref<4xf32, #tpu.memory_space<smem>>, %arg3: memref<8x128xf32, #tpu.memory_space<vmem>>, %arg4: memref<128x256xbf16, #tpu.memory_space<vmem>>, %arg5: memref<1x256xf32, #tpu.memory_space<vmem>>, %arg6: memref<256x128xbf16, #tpu.memory_space<vmem>>, %arg7: memref<1x128xf32, #tpu.memory_space<vmem>>, %arg8: memref<3x128xf32, #tpu.memory_space<vmem>>, %arg9: memref<8x1xf32, #tpu.memory_space<vmem>>, %arg10: memref<8x1xf32, #tpu.memory_space<vmem>>, %arg11: memref<8x128xf32, #tpu.memory_space<vmem>>, %arg12: memref<8x128xf32, #tpu.memory_space<vmem>>) attributes {dimension_semantics = [#tpu.dimension_semantics<parallel>, #tpu.dimension_semantics<arbitrary>], iteration_bounds = array<i64: 2, 1>, scalar_prefetch = 0 : i64, scratch_operands = 1 : i64, tpu.core_type = #tpu.core_type<tc>, window_params = [{transform_indices = @transform_0, window_bounds = array<i64: 4>}, {transform_indices = @transform_1, window_bounds = array<i64: 8, 128>}, {transform_indices = @transform_2, window_bounds = array<i64: 128, 256>}, {transform_indices = @transform_3, window_bounds = array<i64: 1, 256>}, {transform_indices = @transform_4, window_bounds = array<i64: 256, 128>}, {pipeline_mode = #tpu.pipeline_mode<synchronous>, transform_indices = @transform_5, window_bounds = array<i64: 1, 128>}, {pipeline_mode = #tpu.pipeline_mode<synchronous>, transform_indices = @transform_6, window_bounds = array<i64: 3, 128>}, {pipeline_mode = #tpu.pipeline_mode<synchronous>, transform_indices = @transform_7, window_bounds = array<i64: 8, 1>}, {pipeline_mode = #tpu.pipeline_mode<synchronous>, transform_indices = @transform_8, window_bounds = array<i64: 8, 1>}, {transform_indices = @transform_9, window_bounds = array<i64: 8, 128>}]} {
    %c0 = arith.constant 0 : index
    %c0_0 = arith.constant 0 : index
    %0 = vector.load %arg3[%c0, %c0_0] : memref<8x128xf32, #tpu.memory_space<vmem>>, vector<8x128xf32>
    %c0_i32 = arith.constant 0 : i32
    %1 = arith.cmpi eq, %arg1, %c0_i32 : i32
    %2 = arith.extui %1 : i1 to i32
    %c0_i32_1 = arith.constant 0 : i32
    %3 = arith.cmpi ne, %2, %c0_i32_1 : i32
    scf.if %3 {
      %cst_5 = arith.constant 0.000000e+00 : f32
      %11 = vector.broadcast %cst_5 : f32 to vector<8x128xf32>
      %c0_6 = arith.constant 0 : index
      %c0_7 = arith.constant 0 : index
      %12 = vector.load %arg12[%c0_6, %c0_7] : memref<8x128xf32, #tpu.memory_space<vmem>>, vector<8x128xf32>
      tpu.vector_store %arg12[%c0_6, %c0_7], %11 {strides = array<i32>} : memref<8x128xf32, #tpu.memory_space<vmem>>, vector<8x128xf32>,
    } else {
    }
    %c2 = arith.constant 2 : index
    %4 = memref.load %arg2[%c2] : memref<4xf32, #tpu.memory_space<smem>>
    %cst = arith.constant 0.000000e+00 : f32
    %5 = arith.cmpf one, %4, %cst : f32
    %6 = arith.extui %5 : i1 to i32
    %c0_i32_2 = arith.constant 0 : i32
    %7 = arith.cmpi ne, %6, %c0_i32_2 : i32
    scf.if %7 {
      %11 = arith.truncf %0 : vector<8x128xf32> to vector<8x128xbf16>
      %c0_5 = arith.constant 0 : index
      %c0_6 = arith.constant 0 : index
      %12 = vector.load %arg4[%c0_5, %c0_6] : memref<128x256xbf16, #tpu.memory_space<vmem>>, vector<128x256xbf16>
      %cst_7 = arith.constant dense<0.000000e+00> : vector<8x256xf32>
      %13 = tpu.matmul %11, %12, %cst_7 {dimension_numbers = #tpu.dot_dimension_numbers<[1], [0], [0], [1], [0, 0, 1, 1], [], []>} : vector<8x128xbf16>, vector<128x256xbf16>, vector<8x256xf32> -> vector<8x256xf32>
      %c0_8 = arith.constant 0 : index
      %c0_9 = arith.constant 0 : index
      %14 = vector.load %arg5[%c0_8, %c0_9] : memref<1x256xf32, #tpu.memory_space<vmem>>, vector<1x256xf32>
      %15 = vector.broadcast %14 : vector<1x256xf32> to vector<8x256xf32>
      %16 = arith.addf %13, %15 : vector<8x256xf32>
      %cst_10 = arith.constant 0.000000e+00 : f32
      %17 = vector.broadcast %cst_10 : f32 to vector<8x256xf32>
      %18 = arith.maximumf %16, %17 : vector<8x256xf32>
      %c0_11 = arith.constant 0 : index
      %c0_12 = arith.constant 0 : index
      %19 = vector.load %arg12[%c0_11, %c0_12] : memref<8x128xf32, #tpu.memory_space<vmem>>, vector<8x128xf32>
      %20 = arith.truncf %18 : vector<8x256xf32> to vector<8x256xbf16>
      %c0_13 = arith.constant 0 : index
      %c0_14 = arith.constant 0 : index
      %21 = vector.load %arg6[%c0_13, %c0_14] : memref<256x128xbf16, #tpu.memory_space<vmem>>, vector<256x128xbf16>
      %cst_15 = arith.constant dense<0.000000e+00> : vector<8x128xf32>
      %22 = tpu.matmul %20, %21, %cst_15 {dimension_numbers = #tpu.dot_dimension_numbers<[1], [0], [0], [1], [0, 0, 1, 1], [], []>} : vector<8x256xbf16>, vector<256x128xbf16>, vector<8x128xf32> -> vector<8x128xf32>
      %23 = arith.addf %19, %22 : vector<8x128xf32>
      %c0_16 = arith.constant 0 : index
      %c0_17 = arith.constant 0 : index
      %24 = vector.load %arg12[%c0_16, %c0_17] : memref<8x128xf32, #tpu.memory_space<vmem>>, vector<8x128xf32>
      tpu.vector_store %arg12[%c0_16, %c0_17], %23 {strides = array<i32>} : memref<8x128xf32, #tpu.memory_space<vmem>>, vector<8x128xf32>,
    } else {
    }
    %c0_i32_3 = arith.constant 0 : i32
    %8 = arith.cmpi eq, %arg1, %c0_i32_3 : i32
    %9 = arith.extui %8 : i1 to i32
    %c0_i32_4 = arith.constant 0 : i32
    %10 = arith.cmpi ne, %9, %c0_i32_4 : i32
    scf.if %10 {
      %c1 = arith.constant 1 : index
      %11 = memref.load %arg2[%c1] : memref<4xf32, #tpu.memory_space<smem>>
      %c2_5 = arith.constant 2 : index
      %12 = memref.load %arg2[%c2_5] : memref<4xf32, #tpu.memory_space<smem>>
      %c3 = arith.constant 3 : index
      %13 = memref.load %arg2[%c3] : memref<4xf32, #tpu.memory_space<smem>>
      %c0_6 = arith.constant 0 : index
      %c0_7 = arith.constant 0 : index
      %14 = vector.load %arg8[%c0_6, %c0_7] : memref<3x128xf32, #tpu.memory_space<vmem>>, vector<3x128xf32>
      %15 = vector.broadcast %13 : f32 to vector<3x128xf32>
      %16 = arith.mulf %15, %14 : vector<3x128xf32>
      %c1_i32 = arith.constant 1 : i32
      %17 = tpu.dynamic_rotate %0 by %c1_i32 dim 0 : vector<8x128xf32>, i32 -> vector<8x128xf32>
      %c0_8 = arith.constant 0 : index
      %c0_9 = arith.constant 0 : index
      %18 = vector.load %arg9[%c0_8, %c0_9] : memref<8x1xf32, #tpu.memory_space<vmem>>, vector<8x1xf32>
      %19 = vector.broadcast %18 : vector<8x1xf32> to vector<8x128xf32>
      %20 = arith.mulf %17, %19 : vector<8x128xf32>
      %c7_i32 = arith.constant 7 : i32
      %21 = tpu.dynamic_rotate %0 by %c7_i32 dim 0 : vector<8x128xf32>, i32 -> vector<8x128xf32>
      %c0_10 = arith.constant 0 : index
      %c0_11 = arith.constant 0 : index
      %22 = vector.load %arg10[%c0_10, %c0_11] : memref<8x1xf32, #tpu.memory_space<vmem>>, vector<8x1xf32>
      %23 = vector.broadcast %22 : vector<8x1xf32> to vector<8x128xf32>
      %24 = arith.mulf %21, %23 : vector<8x128xf32>
      %c0_12 = arith.constant 0 : index
      %c0_13 = arith.constant 0 : index
      %25 = vector.load %arg12[%c0_12, %c0_13] : memref<8x128xf32, #tpu.memory_space<vmem>>, vector<8x128xf32>
      %c0_14 = arith.constant 0 : index
      %c0_15 = arith.constant 0 : index
      %26 = vector.load %arg7[%c0_14, %c0_15] : memref<1x128xf32, #tpu.memory_space<vmem>>, vector<1x128xf32>
      %27 = vector.broadcast %26 : vector<1x128xf32> to vector<8x128xf32>
      %28 = arith.addf %25, %27 : vector<8x128xf32>
      %29 = vector.broadcast %12 : f32 to vector<8x128xf32>
      %30 = arith.mulf %29, %28 : vector<8x128xf32>
      %31 = vector.extract_strided_slice %16 {offsets = [1, 0], sizes = [1, 128], strides = [1, 1]} : vector<3x128xf32> to vector<1x128xf32>
      %32 = vector.broadcast %11 : f32 to vector<1x128xf32>
      %33 = arith.addf %31, %32 : vector<1x128xf32>
      %34 = vector.broadcast %33 : vector<1x128xf32> to vector<8x128xf32>
      %35 = arith.mulf %0, %34 : vector<8x128xf32>
      %36 = arith.addf %30, %35 : vector<8x128xf32>
      %37 = vector.extract_strided_slice %16 {offsets = [0, 0], sizes = [1, 128], strides = [1, 1]} : vector<3x128xf32> to vector<1x128xf32>
      %38 = vector.broadcast %37 : vector<1x128xf32> to vector<8x128xf32>
      %39 = arith.mulf %20, %38 : vector<8x128xf32>
      %40 = arith.addf %36, %39 : vector<8x128xf32>
      %41 = vector.extract_strided_slice %16 {offsets = [2, 0], sizes = [1, 128], strides = [1, 1]} : vector<3x128xf32> to vector<1x128xf32>
      %42 = vector.broadcast %41 : vector<1x128xf32> to vector<8x128xf32>
      %43 = arith.mulf %24, %42 : vector<8x128xf32>
      %44 = arith.addf %40, %43 : vector<8x128xf32>
      %c0_16 = arith.constant 0 : index
      %c0_17 = arith.constant 0 : index
      %45 = vector.load %arg11[%c0_16, %c0_17] : memref<8x128xf32, #tpu.memory_space<vmem>>, vector<8x128xf32>
      tpu.vector_store %arg11[%c0_16, %c0_17], %44 {strides = array<i32>} : memref<8x128xf32, #tpu.memory_space<vmem>>, vector<8x128xf32>,
    } else {
    }
    return
  }
  func.func @transform_0(%arg0: i32, %arg1: i32) -> i32 {
    %c0_i32 = arith.constant 0 : i32
    %c0_i32_0 = arith.constant 0 : i32
    return %c0_i32 : i32
  }
  func.func @transform_1(%arg0: i32, %arg1: i32) -> (i32, i32) {
    %c0_i32 = arith.constant 0 : i32
    %c0_i32_0 = arith.constant 0 : i32
    return %arg0, %c0_i32 : i32, i32
  }
  func.func @transform_2(%arg0: i32, %arg1: i32) -> (i32, i32) {
    %c0_i32 = arith.constant 0 : i32
    %c0_i32_0 = arith.constant 0 : i32
    return %c0_i32, %arg1 : i32, i32
  }
  func.func @transform_3(%arg0: i32, %arg1: i32) -> (i32, i32) {
    %c0_i32 = arith.constant 0 : i32
    %c0_i32_0 = arith.constant 0 : i32
    return %c0_i32, %arg1 : i32, i32
  }
  func.func @transform_4(%arg0: i32, %arg1: i32) -> (i32, i32) {
    %c0_i32 = arith.constant 0 : i32
    %c0_i32_0 = arith.constant 0 : i32
    return %arg1, %c0_i32 : i32, i32
  }
  func.func @transform_5(%arg0: i32, %arg1: i32) -> (i32, i32) {
    %c0_i32 = arith.constant 0 : i32
    %c0_i32_0 = arith.constant 0 : i32
    %c0_i32_1 = arith.constant 0 : i32
    return %c0_i32, %c0_i32_0 : i32, i32
  }
  func.func @transform_6(%arg0: i32, %arg1: i32) -> (i32, i32) {
    %c0_i32 = arith.constant 0 : i32
    %c0_i32_0 = arith.constant 0 : i32
    %c0_i32_1 = arith.constant 0 : i32
    return %c0_i32, %c0_i32_0 : i32, i32
  }
  func.func @transform_7(%arg0: i32, %arg1: i32) -> (i32, i32) {
    %c0_i32 = arith.constant 0 : i32
    %c0_i32_0 = arith.constant 0 : i32
    %c0_i32_1 = arith.constant 0 : i32
    return %c0_i32, %c0_i32_0 : i32, i32
  }
  func.func @transform_8(%arg0: i32, %arg1: i32) -> (i32, i32) {
    %c0_i32 = arith.constant 0 : i32
    %c0_i32_0 = arith.constant 0 : i32
    %c0_i32_1 = arith.constant 0 : i32
    return %c0_i32, %c0_i32_0 : i32, i32
  }
  func.func @transform_9(%arg0: i32, %arg1: i32) -> (i32, i32) {
    %c0_i32 = arith.constant 0 : i32
    %c0_i32_0 = arith.constant 0 : i32
    return %arg0, %c0_i32 : i32, i32
  }
}

</mosaic_0001>

<bundles_post_ra>
// kernel: tpu_custom_call.1
= control target key start
LH: loop header
LB: loop body
LE: loop exit
PB: predicated region body
PF: predicated region fallthrough
CT: control target
= control target key end

     0   :  { %s1612_s0 = inlined_call_operand.vmem [shape: f32[4], index: 0, kind: input, shape index: {}]   ;;  %s1613_s1 = inlined_call_operand.vmem [shape: f32[16,128], index: 1, kind: input, shape index: {}]   ;;  %s1614_s2 = inlined_call_operand.hbm [shape: bf16[128,256], index: 2, kind: input, shape index: {}]   ;;  %s1615_s3 = inlined_call_operand.vmem [shape: f32[1,256], index: 3, kind: input, shape index: {}]   ;;  %s1616_s4 = inlined_call_operand.hbm [shape: bf16[256,128], index: 4, kind: input, shape index: {}]   ;;  %s1617_s5 = inlined_call_operand.vmem [shape: f32[1,128], index: 5, kind: input, shape index: {}]   ;;  %s1618_s6 = inlined_call_operand.vmem [shape: f32[3,128], index: 6, kind: input, shape index: {}]   ;;  %s1619_s7 = inlined_call_operand.vmem [shape: f32[8,1], index: 7, kind: input, shape index: {}]   ;;  %s1620_s8 = inlined_call_operand.vmem [shape: f32[8,1], index: 8, kind: input, shape index: {}]   ;;  %s1621_s9 = inlined_call_operand.hbm [shape: f32[16,128], index: 9, kind: output, shape index: {}]  }
   0x1   :  { %1631 = sst [smem:[#allocation21_spill]] %s1612_s0 }
   0x2   :  { %14 = vsyncpa [#allocation6], 0 }
   0x3   :  { %15 = vsyncpa [#allocation4], 0 }
   0x4   :  { %16 = vsyncpa [#allocation9], 0 }
   0x5   :  { %17 = vsyncpa [#allocation5], 0 }
   0x6   :  { %19 = vsyncpa [#allocation5 + $0x1], 0  ;;  %s1381_s30 = smov 0   ;;  %s1383_s10 = smov 0  }
   0x7   :  { %s1385_s11 = smov 0   ;;  %s1387_s12 = smov 0  }
   0x8   :  { %s1389_s13 = smov 0   ;;  %s1391_s14 = smov 0  }
   0x9 LB: > { %1632 = sst [smem:[#allocation15_spill]] %s1298_s30  ;;  %s946_s15 = sadd.s32 4294967295, %s1318_s14   ;;  %s1318_s14 = sphi %s1391_s14, %s25_s14   ;;  %s1314_s13 = sphi %s1389_s13, %s1654_s13   ;;  %s1310_s12 = sphi %s1387_s12, %s1653_s12   ;;  %s1306_s11 = sphi %s1385_s11, %s1652_s11   ;;  %s1302_s10 = sphi %s1383_s10, %s1656_s10   ;;  %s1298_s30 = sphi %s1381_s30, %s1655_s30  }
   0xa   : > { %1633 = sst [smem:[#allocation16_spill]] %s1306_s11  ;;  %s947_s16 = sadd.s32 4294967294, %s1318_s14  }
   0xb   : > { %1634 = sst [smem:[#allocation17_spill]] %s1314_s13  ;;  %s37_s17 = sadd.s32 1, %s1314_s13 }
   0xc   : > { %s253_s18 = sadd.s32 1, %s1306_s11  ;;  %p39_p0 = scmp.ge.s32.totalorder %s37_s17, 2 }
   0xd   : > { %p263_p1 = scmp.ne.s32.totalorder %s1306_s11, %s1302_s10  ;;  %p264_p2 = scmp.eq.s32.totalorder %s946_s15, 1 }
   0xe   : > { %p269_p3 = scmp.ne.s32.totalorder %s1302_s10, %s1298_s30  ;;  %s1658_s17 = smov (%p39_p0, %s37_s17), 0 }
   0xf   : > { %1635 = sst [smem:[#allocation18_spill]] %s1658_s17  ;;  %p1421_p4 = por %p264_p2, %p263_p1 }
  0x10   : > { %p270_p5 = scmp.eq.s32.totalorder %s947_s16, 1  ;;  %s250_s20 = ssub.s32 %s1314_s13, %s1658_s17 }
  0x11   : > { %s1636_s19 = scalar_select %p1421_p4, 1, 0 }
  0x12   : > { %p948_p6 = scmp.ge.s32.totalorder %s1318_s14, 1  ;;  %p251_p7 = scmp.eq.s32.totalorder %s250_s20, 0 }
  0x13   : > { %p1428_p8 = por %p270_p5, %p269_p3  ;;  %p277_p9 = scmp.lt.s32.totalorder %s1318_s14, 3 }
  0x14   : > { %s1434_s22 = scalar_select %p251_p7, %s1306_s11, %s253_s18  }
  0x15   : > { %s1637_s21 = scalar_select %p1428_p8, 1, 0 }
  0x16   : > { %1639 = sst [smem:[#allocation20_spill]] %s1434_s22  ;;  %p1436_p10 = pnand %p948_p6, %p277_p9 }
  0x17   : > { %1638 = sst [smem:[#allocation19_spill]] %s1637_s21  ;;  %p1440_p11 = scmp.eq.s32.totalorder %s946_s15, 0 }
  0x18   : > { %s1640_s23 = scalar_select %p1436_p10, 1, 0 }
  0x19   : > { %s1641_s24 = scalar_select %p1440_p11, 1, 0 }
  0x1a   : > { %s1642_s0 = sld [smem:[#allocation21_spill]]  ;;  %p1037_p12 = pneg %p1436_p10 }
  0x1b   : > { %s1320_s29 = smov [#allocation7]  }
  0x1c   : > { %p1451_p13 = pnand %p1440_p11, %p1037_p12  ;;  %s303_s16 = sshll.u32 %s1320_s29, 4  ;;  %s1455_s16 = int_to_ptr.vmem [resolvable:$true] %s303_s16 }
  0x1e   : > { %p1459_p1 = pneg %p1451_p13 }
  0x20   : > { %s290_s27 = sshll.u32 %s1642_s0, 4  ;;  %s291_s27 = int_to_ptr.vmem [resolvable:$true] %s290_s27 }
  0x21   : > { %s1157_s15 = scalar_lea.vmem %s291_s27, 16  ;;  %p1165_p5 = scmp.lt.s32.totalorder %s291_s27, %s291_s27 }
  0x22   : > { %p1158_p0 = scmp.ne.s32.totalorder %s291_s27, %s1157_s15  ;;  %p1166_p6 = scmp.lt.s32.totalorder %s1157_s15, %s1157_s15 }
  0x24   : > { %p1160_p2 = pnand %p1459_p1, %p1158_p0  ;;  %p1167_p7 = por %p1166_p6, %p1165_p5 }
  0x26   : > { %p1161_p3 = pneg %p1160_p2 }
  0x28   : > { %p1168_p9 = pnand %p1167_p7, %p1161_p3 }
  0x2a   : > { %1171 = shalt.err (!%p1168_p9)
}
  0x2b   : > { %s1321_s20 = smov [#allocation3]   ;;  %s1172_s29 = scalar_lea.hbm %s1614_s2, 2048 }
  0x2c   : > { %1040 = dma.vmem_to_smem (!%p1451_p13), %s291_s27, 16, %s1321_s20, [#allocation6]  }
  0x2d   : > { %p1173_p12 = scmp.ne.s32.totalorder %s1614_s2, %s1172_s29  ;;  %p1179_p3 = scmp.lt.u32.totalorder %s1172_s29, %s1614_s2 }
  0x2f   : > { %p1175_p0 = pnand %p1173_p12, %p1459_p1 }
  0x31   : > { %p1176_p2 = pneg %p1175_p0 }
  0x33   : > { %p1181_p5 = pnand %p1179_p3, %p1176_p2 }
  0x35   : > { %1184 = shalt.err (!%p1181_p5)
}
  0x36   : > { %s1185_s27 = scalar_lea.vmem %s1455_s16, 2048  ;;  %p1193_p8 = scmp.lt.s32.totalorder %s1455_s16, %s1455_s16 }
  0x37   : > { %p1186_p6 = scmp.ne.s32.totalorder %s1455_s16, %s1185_s27  ;;  %p1194_p4 = scmp.lt.s32.totalorder %s1185_s27, %s1185_s27 }
  0x39   : > { %p1188_p7 = pnand %p1186_p6, %p1459_p1  ;;  %p1195_p12 = por %p1194_p4, %p1193_p8 }
  0x3b   : > { %p1189_p9 = pneg %p1188_p7 }
  0x3d   : > { %p1196_p0 = pnand %p1195_p12, %p1189_p9 }
  0x3f   : > { %1199 = shalt.err (!%p1196_p0)
}
  0x40   : > { %s1322_s0 = smov 128   ;;  %s1323_s13 = smov 8  }
  0x41   : > { %1043 = dma.hbm_to_vmem [thread:$0]  (!%p1451_p13), %s1614_s2, 2048, %s1455_s16, [#allocation4], %s1322_s0, %s1322_s0, %s1323_s13  }
  0x42   : > { %s1324_s25 = smov [#allocation8]   ;;  %s1200_s27 = scalar_lea.hbm %s1616_s4, 2048 }
  0x43   : > { %s327_s26 = sshll.u32 %s1324_s25, 4  ;;  %p1201_p4 = scmp.ne.s32.totalorder %s1616_s4, %s1200_s27  ;;  %s328_s26 = int_to_ptr.vmem [resolvable:$true] %s327_s26 }
  0x44   : > { %p1207_p3 = scmp.lt.u32.totalorder %s1200_s27, %s1616_s4 }
  0x45   : > { %p1203_p8 = pnand %p1201_p4, %p1459_p1 }
  0x47   : > { %p1204_p2 = pneg %p1203_p8 }
  0x49   : > { %p1209_p5 = pnand %p1207_p3, %p1204_p2 }
  0x4b   : > { %1212 = shalt.err (!%p1209_p5)
}
  0x4c   : > { %s1213_s16 = scalar_lea.vmem %s328_s26, 2048  ;;  %p1221_p12 = scmp.lt.s32.totalorder %s328_s26, %s328_s26 }
  0x4d   : > { %p1214_p6 = scmp.ne.s32.totalorder %s328_s26, %s1213_s16  ;;  %p1222_p0 = scmp.lt.s32.totalorder %s1213_s16, %s1213_s16 }
  0x4f   : > { %p1216_p7 = pnand %p1214_p6, %p1459_p1  ;;  %p1223_p11 = por %p1222_p0, %p1221_p12 }
  0x51   : > { %p1217_p9 = pneg %p1216_p7 }
  0x53   : > { %p1224_p10 = pnand %p1223_p11, %p1217_p9 }
  0x55   : > { %1227 = shalt.err (!%p1224_p10)
}
  0x56   : > { %s1325_s11 = smov 64   ;;  %s1326_s22 = smov 4  }
  0x57   : > { %1046 = dma.hbm_to_vmem [thread:$0]  (!%p1451_p13), %s1616_s4, 2048, %s328_s26, [#allocation9], %s1325_s11, %s1325_s11, %s1326_s22  }
  0x58   : > { %p1645_p4 = scmp.ne.s32.totalorder %s1640_s23, 0 }
  0x59   : > { %p1646_p8 = scmp.ne.s32.totalorder (!%p1645_p4), %s1641_s24, 0 }
  0x5a   : > { %362 = sbr.rel (%p1645_p4) target bundleno = 737 (0x2e1), region = 56 }
  0x61   : > { %1281 = dma.done.wait (%p1646_p8), [#allocation6], 16  }
  0x62   : > { %1283 = vsyncadd (%p1646_p8), [#allocation6], 4294967280 }
  0x63   : > { %1285 = dma.done.wait (%p1646_p8), [#allocation4], 2048  }
  0x64   : > { %1287 = vsyncadd (%p1646_p8), [#allocation4], 4294965248 }
  0x65   : > { %1289 = dma.done.wait (%p1646_p8), [#allocation9], 2048  }
  0x66   : > { %1291 = vsyncadd (%p1646_p8), [#allocation9], 4294965248 }
  0x67   : > { %376 = sfence }
  0x68   : > { %s407_s21 = sand.u32 1, %s1302_s10   ;;  %p410_p10 = scmp.lt.s32.totalorder %s1310_s12, 1  ;;  %v1327_v0 = vmov 0.0  }
  0x69   : > { %s1526_s23 = sshll.u32 %s407_s21, 3  ;;  %427 = vst [vmem:[#allocation2] sm:$0xff] %v1327_v0  ;;  %s960_s28 = sld [smem:[#allocation3 + $0x2]] }
  0x6a   : > { %s411_s18 = scalar_select %p410_p10, %s1310_s12, 1 }
  0x6b   : > { %s409_s25 = scalar_lea.vmem [#allocation10], %s1526_s23 }
  0x6c   : > { %s959_s13 = sshll.u32 %s411_s18, 3 }
  0x6d   : > { %s413_s24 = scalar_lea.vmem %s1613_s1, %s959_s13 }
  0x6e   : > { %v1532_v1 = vld [vmem:[%s413_s24] sm:$0xff] }
  0x6f   : > { %p429_p11 = scmp.ne.f32.partialorder %s960_s28, 0.0 }
  0x70   : > { %v1116_v2 = vld [vmem:[#allocation7 + $0x4] ss:$8 sps:$4 sm:$0xff] (%p429_p11)   ;;  %v1118_v3 = vld [vmem:[#allocation7] ss:$8 sps:$4 sm:$0xff] (%p429_p11)   ;;  %v1328_v4 = vmov (%p429_p11), 0   ;;  %v1144_v17 = vld [vmem:[#allocation8 + $0x50] sm:$0xff] (%p429_p11)   ;;  %v433_v30 = vpack.c.bf16 (%p429_p11), %v1532_v1, %v1532_v1  ;;  %v452_v36 = vlaneseq (%p429_p11) }
  0x71   : > { %432 = sbr.rel (!%p429_p11) target bundleno = 583 (0x247), region = 76  ;;  %574 = vmatprep.mubr.bf16.mxu0 (%p429_p11), %v1328_v4  ;;  %542 = vmatprep.subr.bf16.mxu0 (%p429_p11), %v1116_v2  ;;  %v1119_v5 = vld [vmem:[#allocation7 + $0x14] ss:$8 sps:$4 sm:$0xff] (%p429_p11)   ;;  %v1121_v6 = vld [vmem:[#allocation7 + $0x10] ss:$8 sps:$4 sm:$0xff] (%p429_p11)   ;;  %v1140_v12 = vld [vmem:[#allocation8 + $0x40] sm:$0xff] (%p429_p11)  }
  0x72   : > { %543 = vmatpush1.bf16.msra.mxu0 (%p429_p11), %v1118_v3  ;;  %v1122_v7 = vld [vmem:[#allocation7 + $0x24] ss:$8 sps:$4 sm:$0xff] (%p429_p11)   ;;  %v1124_v8 = vld [vmem:[#allocation7 + $0x20] ss:$8 sps:$4 sm:$0xff] (%p429_p11)   ;;  %v1125_v9 = vld [vmem:[#allocation7 + $0x34] ss:$8 sps:$4 sm:$0xff] (%p429_p11)   ;;  %1001 = vmatprep.subr.bf16.mxu1 (%p429_p11), %v1140_v12 }
  0x73   : > { %544 = vmatprep.subr.bf16.mxu0 (%p429_p11), %v1119_v5  ;;  %v1127_v10 = vld [vmem:[#allocation7 + $0x30] ss:$8 sps:$4 sm:$0xff] (%p429_p11)   ;;  %v1128_v11 = vld [vmem:[#allocation7 + $0x44] ss:$8 sps:$4 sm:$0xff] (%p429_p11)   ;;  %v1130_v14 = vld [vmem:[#allocation7 + $0x40] ss:$8 sps:$4 sm:$0xff] (%p429_p11)  }
  0x74   : > { %v1141_v13 = vld [vmem:[#allocation8] sm:$0xff] (%p429_p11)   ;;  %v1142_v15 = vld [vmem:[#allocation8 + $0x48] sm:$0xff] (%p429_p11)   ;;  %v1131_v18 = vld [vmem:[#allocation7 + $0x54] ss:$8 sps:$4 sm:$0xff] (%p429_p11)   ;;  %v453_v37 = vshrl.u32 (%p429_p11), %v452_v36, 7 }
  0x75   : > { %1002 = vmatpush3.bf16.msra.mxu1 (%p429_p11), %v1141_v13  ;;  %v1143_v16 = vld [vmem:[#allocation8 + $0x8] sm:$0xff] (%p429_p11)   ;;  %v1133_v19 = vld [vmem:[#allocation7 + $0x50] ss:$8 sps:$4 sm:$0xff] (%p429_p11)   ;;  %v1137_v24 = vld [vmem:[#allocation7 + $0x74] ss:$8 sps:$4 sm:$0xff] (%p429_p11)  }
  0x76   : > { %545 = vmatpush1.bf16.msra.mxu0 (%p429_p11), %v1121_v6  ;;  %1003 = vmatprep.subr.bf16.mxu1 (%p429_p11), %v1142_v15  ;;  %v1145_v20 = vld [vmem:[#allocation8 + $0x10] sm:$0xff] (%p429_p11)   ;;  %v1146_v21 = vld [vmem:[#allocation8 + $0x58] sm:$0xff] (%p429_p11)   ;;  %v1134_v22 = vld [vmem:[#allocation7 + $0x64] ss:$8 sps:$4 sm:$0xff] (%p429_p11)   ;;  %v454_v38 = vsub.s32 (%p429_p11), 0, %v453_v37  ;;  %v458_v40 = vsub.s32 (%p429_p11), 1, %v453_v37 }
  0x77   : > { %546 = vmatprep.subr.bf16.mxu0 (%p429_p11), %v1122_v7  ;;  %v1136_v23 = vld [vmem:[#allocation7 + $0x60] ss:$8 sps:$4 sm:$0xff] (%p429_p11)   ;;  %v1147_v25 = vld [vmem:[#allocation8 + $0x18] sm:$0xff] (%p429_p11)   ;;  %v1152_v32 = vld [vmem:[#allocation8 + $0x70] sm:$0xff] (%p429_p11)  }
  0x78   : > { %v1148_v26 = vld [vmem:[#allocation8 + $0x60] sm:$0xff]   ;;  %v1139_v28 = vld [vmem:[#allocation7 + $0x70] ss:$8 sps:$4 sm:$0xff]   ;;  %v1150_v29 = vld [vmem:[#allocation8 + $0x68] sm:$0xff]  }
  0x79   : > { %1004 = vmatpush3.bf16.msra.mxu1 %v1143_v16  ;;  %v1149_v27 = vld [vmem:[#allocation8 + $0x20] sm:$0xff]   ;;  %v1151_v31 = vld [vmem:[#allocation8 + $0x28] sm:$0xff]   ;;  %v1153_v33 = vld [vmem:[#allocation8 + $0x30] sm:$0xff]  }
  0x7a   : > { %547 = vmatpush1.bf16.msra.mxu0 %v1124_v8  ;;  %1005 = vmatprep.subr.bf16.mxu1 %v1144_v17  ;;  %v1154_v34 = vld [vmem:[#allocation8 + $0x78] sm:$0xff]  }
  0x7b   : > { %548 = vmatprep.subr.bf16.mxu0 %v1125_v9  ;;  %v1155_v35 = vld [vmem:[#allocation8 + $0x38] sm:$0xff]  }
  0x7c   : > { %v450_v39 = vld [vmem:[%s1615_s3] sm:$0x3] }
  0x7d   : > { %1006 = vmatpush3.bf16.msra.mxu1 %v1145_v20  ;;  %v455_v41 = vrot.slane %v450_v39, %v454_v38  ;;  %v459_v42 = vrot.slane %v450_v39, %v458_v40  ;;  %v585_v54 = vld [vmem:[#allocation2] sm:$0xff] }
  0x7e   : > { %549 = vmatpush1.bf16.msra.mxu0 %v1127_v10  ;;  %1007 = vmatprep.subr.bf16.mxu1 %v1146_v21 }
  0x7f   : > { %550 = vmatprep.subr.bf16.mxu0 %v1128_v11 }
  0x81   : > { %1008 = vmatpush3.bf16.msra.mxu1 %v1147_v25 }
  0x82   : > { %551 = vmatpush1.bf16.msra.mxu0 %v1130_v14  ;;  %1009 = vmatprep.subr.bf16.mxu1 %v1148_v26 }
  0x83   : > { %552 = vmatprep.subr.bf16.mxu0 %v1131_v18 }
  0x85   : > { %1010 = vmatpush3.bf16.msra.mxu1 %v1149_v27 }
  0x86   : > { %553 = vmatpush1.bf16.msra.mxu0 %v1133_v19  ;;  %1011 = vmatprep.subr.bf16.mxu1 %v1150_v29 }
  0x87   : > { %554 = vmatprep.subr.bf16.mxu0 %v1134_v22 }
  0x89   : > { %1012 = vmatpush3.bf16.msra.mxu1 %v1151_v31 }
  0x8a   : > { %555 = vmatpush1.bf16.msra.mxu0 %v1136_v23  ;;  %1013 = vmatprep.subr.bf16.mxu1 %v1152_v32 }
  0x8b   : > { %556 = vmatprep.subr.bf16.mxu0 %v1137_v24 }
  0x8d   : > { %1014 = vmatpush3.bf16.msra.mxu1 %v1153_v33 }
  0x8e   : > { %557 = vmatpush1.bf16.msra.mxu0 %v1139_v28  ;;  %1015 = vmatprep.subr.bf16.mxu1 %v1154_v34 }
  0x91   : > { %575 = vmatmul.mubr.bf16.vlgmr.msra.gmra.mrb[0].mxu0 %v433_v30  ;;  %1016 = vmatpush3.bf16.msra.mxu1 %v1155_v35 }
 0x164   : > { %v576_v43 = vpop.f32.mrb[0].mxu0 }
 0x165   : > { %v577_v44 = vadd.f32 %v576_v43, %v455_v41  ;;  %v578_v45 = vpop.f32.mrb[1].mxu0 }
 0x166   : > { %v579_v46 = vadd.f32 %v578_v45, %v459_v42  ;;  %v580_v47 = vpop.f32.mrb[2].mxu0 }
 0x167   : > { %v583_v48 = vmax.f32 %v577_v44, 0.0  ;;  %v581_v49 = vpop.f32.mrb[3].mxu0 }
 0x168   : > { %v584_v50 = vmax.f32 %v579_v46, 0.0 }
 0x169   : > { %v586_v52 = vpack.c.bf16 %v583_v48, %v583_v48 }
 0x16a   : > { %v587_v51 = vpack.c.bf16 %v584_v50, %v584_v50 }
 0x16c   : > { %748 = vmatprep.mubr.bf16.mxu1 %v587_v51 }
 0x16d   : > { %749 = vmatmul.mubr.bf16.vlgmr.msra.gmra.mrb[0].mxu1 %v586_v52 }
 0x240   : > { %v1017_v53 = vpop.f32.mrb[0].mxu1 }
 0x241   : > { %v1018_v55 = vpop.f32.mrb[1].mxu1 }
 0x242   : > { %v1019_v56 = vadd.f32 %v1018_v55, %v1017_v53  ;;  %v1020_v57 = vpop.f32.mrb[2].mxu1 }
 0x243   : > { %v1021_v58 = vpop.f32.mrb[3].mxu1 }
 0x244   : > { %v756_v59 = vadd.f32 %v1019_v56, %v585_v54 }
 0x246   : > { %757 = vst [vmem:[#allocation2] sm:$0xff] %v756_v59 }
 0x247 PF: > { %v768_v60 = vld [vmem:[%s1619_s7] sm:$0xff]  ;;  %v1329_v61 = vmov 0   ;;  %s995_s22 = sld [smem:[#allocation3 + $0x3]]  ;;  %s993_s0 = sld [smem:[#allocation3 + $0x1]]  ;;  %v796_v63 = vlaneseq  ;;  %v767_v14 = vrot.slane %v1532_v1, 7  ;;  %v775_v21 = vrot.slane %v1532_v1, 1 }
 0x248   : > { %1156 = vset.pattern.permute.xlu0 %v1329_v61  ;;  %v776_v62 = vld [vmem:[%s1620_s8] sm:$0xff]  ;;  %s994_s18 = sld [smem:[#allocation3 + $0x2]]  ;;  %s998_s20 = sshll.u32 %s1310_s12, 7 }
 0x249   : > { %771 = vperm.xlu0 %1156, %v768_v60   ;;  %v764_v0 = vld [vmem:[%s1618_s6] sm:$0x7]  ;;  %v797_v3 = vshrl.u32 %v796_v63, 7  ;;  %s829_s24 = sshll.u32 %s409_s25, 4  ;;  %s1561_s15 = scalar_lea.hbm %s1621_s9, %s998_s20  ;;  %s1563_s24 = int_to_ptr.vmem [resolvable:$true] %s829_s24 }
 0x24a   : > { %v996_v9 = vld [vmem:[%s1617_s5] ss:$0 sm:$0xff]  ;;  %s816_s27 = scalar_lea.sflag [#allocation5], %s407_s21  ;;  %s1228_s12 = scalar_lea.vmem %s1563_s24, 128 }
 0x24b   : > { %v798_v6 = vsub.s32 1, %v797_v3  ;;  %v804_v11 = vsub.s32 0, %v797_v3  ;;  %v810_v18 = vsub.s32 2, %v797_v3  ;;  %p1229_p13 = scmp.ne.s32.totalorder %s1563_s24, %s1228_s12  ;;  %p1647_p1 = scmp.ne.s32.totalorder %s1636_s19, 0 }
 0x24c   : > { %s1330_s16 = smov [#allocation10]  }
 0x24d   : > { %779 = vperm.xlu0 %1156, %v776_v62   ;;  %v765_v2 = vstv %s995_s22  ;;  %v794_v5 = vstv %s993_s0  ;;  %v783_v8 = vld [vmem:[#allocation2] sm:$0xff]  ;;  %p1230_p2 = pnand %p1229_p13, %p1647_p1  ;;  %s1232_s11 = sshll.u32 %s1330_s16, 4  ;;  %s1233_s11 = int_to_ptr.vmem [resolvable:$false] %s1232_s11 }
 0x24e   : > { %v766_v4 = vmul.f32 %v765_v2, %v764_v0  ;;  %v791_v10 = vadd.f32 %v996_v9, %v783_v8  ;;  %v792_v13 = vstv %s994_s18  ;;  %s1234_s22 = scalar_lea.vmem %s1233_s11, 256  ;;  %p1235_p5 = scmp.lt.s32.totalorder %s1563_s24, %s1233_s11 }
 0x24f   : > { %p1231_p3 = pneg %p1230_p2  ;;  %p1236_p6 = scmp.lt.s32.totalorder %s1234_s22, %s1228_s12 }
 0x250   : > { %v795_v7 = vadd.f32 %v794_v5, %v766_v4  ;;  %v793_v15 = vmul.f32 %v792_v13, %v791_v10  ;;  %v805_v17 = vrot.slane %v766_v4, %v804_v11  ;;  %v811_v24 = vrot.slane %v766_v4, %v810_v18 }
 0x251   : > { %p1237_p7 = por %p1236_p6, %p1235_p5 }
 0x252   : > { %v799_v12 = vrot.slane %v795_v7, %v798_v6 }
 0x253   : > { %p1238_p9 = pnand %p1237_p7, %p1231_p3 }
 0x254   : > { %v800_v16 = vmul.f32 %v799_v12, %v1532_v1 }
 0x256   : > { %v801_v22 = vadd.f32 %v800_v16, %v793_v15 }
 0x2c8   : > { %v772_v19 = vpop.permute.xlu0 %771 }
 0x2c9   : > { %v774_v20 = vmul.f32 %v772_v19, %v767_v14 }
 0x2cb   : > { %v806_v23 = vmul.f32 %v805_v17, %v774_v20 }
 0x2cc   : > { %v780_v25 = vpop.permute.xlu0 %779 }
 0x2cd   : > { %v782_v26 = vmul.f32 %v780_v25, %v775_v21  ;;  %v807_v27 = vadd.f32 %v806_v23, %v801_v22 }
 0x2cf   : > { %v812_v28 = vmul.f32 %v811_v24, %v782_v26 }
 0x2d1   : > { %v813_v29 = vadd.f32 %v812_v28, %v807_v27 }
 0x2d3   : > { %814 = vst [vmem:[%s409_s25] sm:$0xff] %v813_v29 }
 0x2d4   : > { %1241 = shalt.err (!%p1238_p9)
}
 0x2d5   : > { %s1242_s21 = scalar_lea.hbm %s1561_s15, 128  ;;  %s1246_s0 = scalar_lea.hbm %s1621_s9, 256 }
 0x2d6   : > { %p1243_p12 = scmp.ne.s32.totalorder %s1561_s15, %s1242_s21  ;;  %p1247_p8 = scmp.lt.u32.totalorder %s1561_s15, %s1621_s9 }
 0x2d7   : > { %p1248_p10 = scmp.lt.u32.totalorder %s1246_s0, %s1242_s21  ;;  %p1250_p13 = scmp.lt.u32.totalorder %s1242_s21, %s1561_s15 }
 0x2d8   : > { %p1244_p0 = pnand %p1243_p12, %p1647_p1 }
 0x2d9   : > { %p1249_p11 = por %p1248_p10, %p1247_p8 }
 0x2da   : > { %p1245_p4 = pneg %p1244_p0 }
 0x2db   : > { %p1251_p2 = por %p1250_p13, %p1249_p11 }
 0x2dd   : > { %p1252_p3 = pnand %p1251_p2, %p1245_p4 }
 0x2df   : > { %1255 = shalt.err (!%p1252_p3)
}
 0x2e0   : > { %1035 = dma.vmem_to_hbm [thread:$0]  (%p1647_p1), %s1563_s24, 128, %s1561_s15, %s816_s27  }
 0x2e1 PF: > { %s1648_s18 = sld [smem:[#allocation15_spill]]  ;;  %s1649_s13 = sld [smem:[#allocation19_spill]] }
 0x2e2   : > { %p1057_p5 = scmp.ge.s32.totalorder %s1318_s14, 2 }
 0x2e7   : > { %s841_s17 = sand.u32 1, %s1648_s18   ;;  %p1650_p6 = scmp.ne.s32.totalorder %s1649_s13, 0 }
 0x2e8   : > { %s842_s20 = scalar_lea.sflag [#allocation5], %s841_s17 }
 0x2e9   : > { %p1048_p7 = pnand %p1057_p5, %p1650_p6 }
 0x2eb   : > { %1293 = dma.done.wait (!%p1048_p7), %s842_s20, 128  }
 0x2ec   : > { %1295 = vsyncadd (!%p1048_p7), %s842_s20, 4294967168  ;;  %s25_s14 = sadd.s32 1, %s1318_s14   ;;  %s1651_s26 = sld [smem:[#allocation16_spill]] }
 0x2ed   : > { %p22_p9 = scmp.ge.s32.totalorder %s25_s14, 4   ;;  %s1652_s11 = sld [smem:[#allocation20_spill]] }
 0x2ee   : > { %s1653_s12 = sld [smem:[#allocation17_spill]]  ;;  %s1654_s13 = sld [smem:[#allocation18_spill]] }
 0x2ef   : > { %s1655_s30 = smov %s1302_s10  ;;  %24 = sbr.rel (!%p22_p9) target bundleno = 9 (0x9), region = 122 }
 0x2f2   : > { %s1656_s10 = smov %s1651_s26 }
 0x2f6   :  { %847 = vsyncpa [#allocation4], 1 }
 0x2f7   :  { %849 = vsyncpa [#allocation4 + $0x1], 1 }
 0x2f8   :  { %850 = vsyncpa [#allocation9], 1 }
 0x2f9   :  { %851 = vsyncpa [#allocation5], 1 }
 0x2fa   :  { %853 = vsyncpa [#allocation5 + $0x1], 1 }
 0x2fb   :  { %854 = vsyncpa [#allocation6], 1 }
 0x2fc   :  { %856 = vsyncpa [#allocation6 + $0x1], 1 }

</bundles_post_ra>
